<compile_context>
chip_gen: v7x
topology: tpu7x:2x2x1
jax: 0.10.0
libtpu: 0.0.40
codegen_flags: <defaults>
</compile_context>

<pallas_src>
import jax
import jax.numpy as jnp
from jax.experimental import pallas as pl
from jax.experimental.pallas import tpu as pltpu

NEG_SLOPE = 0.01  # nn.LeakyReLU default


def _leaky_relu(x):
    return jnp.where(x > 0, x, NEG_SLOPE * x)


def _round_up(x, m):
    return (x + m - 1) // m * m


def _is_bf16(dt):
    return jnp.dtype(dt) == jnp.dtype(jnp.bfloat16)


def _num_tensorcores():
    """Best-effort TensorCore count (2 on v7x, 1 on v5e/v6e).  Falls back to 1,
    i.e. never force-splits the batch tile on single-TC chips."""
    try:
        info = pltpu.get_tpu_info()
    except Exception:
        return 1
    for attr in ("num_cores", "core_count", "num_tensorcores", "tensorcore_count"):
        n = getattr(info, attr, None)
        if isinstance(n, int) and n >= 1:
            return n
    return 1


def _vmem_capacity_bytes():
    try:
        return int(pltpu.get_tpu_info().vmem_capacity_bytes)
    except Exception:
        return 64 << 20  # assume the smallest (v7x) if the query fails


def _choose_bm(rows, row_bytes, align, num_tc, budget_bytes=4 << 20):
    """Batch tile from a VMEM budget: big enough to amortise the ~0.35us
    per-grid-step overhead, small enough that double-buffered activation tiles
    stay a few MiB.  Only split a batch that already fits in one tile when the
    chip has more than one TensorCore; keep the grid a multiple of the TC
    count so both cores get equal work."""
    bm_max = max(align, budget_bytes // max(row_bytes, 1) // align * align)
    if rows <= bm_max:
        if num_tc > 1 and rows >= 512:
            return min(rows, _round_up(pl.cdiv(rows, num_tc), align))
        return rows                               # one full block, grid = 1
    g = pl.cdiv(rows, bm_max)
    if num_tc > 1:
        g = _round_up(g, num_tc)
    return min(bm_max, _round_up(pl.cdiv(rows, g), align))


def _predictor_kernel(s_ref, a_ref, w1s_ref, w1a_ref, b1_ref, w2_ref, b2_ref, o_ref):
    # s_ref : (bm, W)   state rows (possibly lane-packed, W = pack*emb)
    # a_ref : (bm, Wa)  action rows (Wa = pack*act_dim)
    # w1s   : (W, W)    layer-1 state weight [in, out] (block-diag if packed)
    # w1a   : (Wa, W)   layer-1 action weight [in, out]
    # b1/b2 : (1, W)    f32 biases
    # w2    : (W, W)    layer-2 weight [in, out]
    # o_ref : (bm, W)
    mxu = w1s_ref.dtype

    # Layer 1 on the MXU, f32 accumulate.  The action contribution is a tiny-K
    # matmul riding the same MXU slot (cheaper and simpler than VPU FMAs).
    h = jnp.dot(s_ref[...].astype(mxu), w1s_ref[...],
                preferred_element_type=jnp.float32)
    h = h + jnp.dot(a_ref[...].astype(mxu), w1a_ref[...],
                    preferred_element_type=jnp.float32)

    # Bias + activation in f32 (v5e's VPU has no bf16 path).
    h = _leaky_relu(h + b1_ref[...])

    # Layer 2 on the MXU, f32 accumulate.
    y = jnp.dot(h.astype(mxu), w2_ref[...], preferred_element_type=jnp.float32)
    y = _leaky_relu(y + b2_ref[...])

    o_ref[...] = y.astype(o_ref.dtype)


def _pack_factor(emb, lane=128):
    """Rows packed per lane group so the minor dim becomes a dense 128 lanes."""
    # TODO(synk): general emb not dividing 128 could pack to lcm(emb,128)/emb;
    # we only handle the common power-of-two case.
    if emb >= lane or lane % emb != 0:
        return 1
    return lane // emb


def prepare_params(params, embedding_dim, *, compute_dtype=jnp.float32):
    """One-time conversion from PyTorch Linear convention (w: [out, in]) to the
    kernel layout.  Do this once at init, NOT per forward call.

    Produces two weight bundles:
      * 'packed' (emb < 128): block-diagonal kron(I_p, W) weights with minor
        dim 128 so in-kernel loads/stores are lane-dense;
      * 'flat': plain split/transposed weights (used when emb >= 128 or the
        batch is not a multiple of the pack factor).
    """
    w1, b1, w2, b2 = params
    w1_t = jnp.asarray(w1, jnp.float32).T               # [emb+act, emb]
    w1s = w1_t[:embedding_dim]                          # [emb, emb]
    w1a = w1_t[embedding_dim:]                          # [act, emb]
    w2_t = jnp.asarray(w2, jnp.float32).T               # [emb, emb]
    b1_r = jnp.asarray(b1, jnp.float32).reshape(1, -1)  # [1, emb]
    b2_r = jnp.asarray(b2, jnp.float32).reshape(1, -1)  # [1, emb]
    act_dim = w1a.shape[0]

    def bundle(p):
        if p == 1:
            return dict(w1s=w1s.astype(compute_dtype),
                        w1a=w1a.astype(compute_dtype),
                        w2=w2_t.astype(compute_dtype),
                        b1=b1_r, b2=b2_r)
        eye = jnp.eye(p, dtype=jnp.float32)
        return dict(w1s=jnp.kron(eye, w1s).astype(compute_dtype),   # (p*emb, p*emb)
                    w1a=jnp.kron(eye, w1a).astype(compute_dtype),   # (p*act, p*emb)
                    w2=jnp.kron(eye, w2_t).astype(compute_dtype),   # (p*emb, p*emb)
                    b1=jnp.tile(b1_r, (1, p)),
                    b2=jnp.tile(b2_r, (1, p)))

    pack = _pack_factor(embedding_dim)
    return dict(emb=embedding_dim, act_dim=act_dim, pack=pack,
                compute_dtype=jnp.dtype(compute_dtype),
                flat=bundle(1),
                packed=bundle(pack) if pack > 1 else None)


def predictor_forward(state_embedding, action, prepared, *, bm=None):
    """prepared = output of prepare_params()."""
    emb, act_dim, pack = prepared["emb"], prepared["act_dim"], prepared["pack"]
    B = state_embedding.shape[0]
    assert state_embedding.shape == (B, emb)
    assert action.shape == (B, act_dim)

    mxu_dtype = prepared["compute_dtype"]
    # bf16 MXU operands => bf16 I/O too: activations are the dominant HBM byte
    # stream for this memory-bound kernel (accumulation/epilogue stay f32).
    io_dtype = jnp.dtype(jnp.bfloat16) if _is_bf16(mxu_dtype) else state_embedding.dtype
    s = state_embedding.astype(io_dtype)
    a = action.astype(io_dtype)

    # Lane packing: view p rows as one 128-lane row (free row-major reshape).
    if pack > 1 and B % pack == 0:
        wgt = prepared["packed"]
        rows = B // pack
        s = s.reshape(rows, pack * emb)
        a = a.reshape(rows, pack * act_dim)
    else:
        wgt = prepared["flat"]
        rows, pack = B, 1

    width = pack * emb
    a_width = pack * act_dim
    io_bytes = jnp.dtype(io_dtype).itemsize
    w_bytes = jnp.dtype(mxu_dtype).itemsize

    align = 16 if _is_bf16(io_dtype) else 8
    if bm is None:
        bm = _choose_bm(rows, (2 * width + a_width) * io_bytes, align,
                        _num_tensorcores())
    else:
        bm = _round_up(max(int(bm), 1), align)
    bm = min(bm, rows)
    grid_m = pl.cdiv(rows, bm)

    # Explicit scoped-VMEM limit from the actual tile + resident-weight sizes,
    # capped below the chip's physical VMEM (v7x has only 64 MiB).
    weight_vmem = (2 * width * width + a_width * width) * w_bytes + 2 * width * 4
    tile_vmem = bm * (2 * width + a_width) * io_bytes
    vmem_limit = int(min(max(2 * tile_vmem + 2 * weight_vmem + (8 << 20), 32 << 20),
                         _vmem_capacity_bytes() * 3 // 4))

    # Grid-invariant operands stay resident in VMEM; once the weights are big,
    # single-buffer them (default pipelining double-buffers even constant
    # index_maps, which doubles resident weight VMEM for no benefit).
    single_buf = width * width * w_bytes >= (2 << 20)

    def resident(shape):
        if single_buf:
            return pl.BlockSpec(shape, lambda i: (0, 0), pipeline_mode=pl.Buffered(1))
        return pl.BlockSpec(shape, lambda i: (0, 0))

    out = pl.pallas_call(
        _predictor_kernel,
        out_shape=jax.ShapeDtypeStruct((rows, width), io_dtype),
        grid_spec=pltpu.PrefetchScalarGridSpec(
            num_scalar_prefetch=0,
            grid=(grid_m,),
            in_specs=[
                pl.BlockSpec((bm, width), lambda i: (i, 0)),      # state tile
                pl.BlockSpec((bm, a_width), lambda i: (i, 0)),    # action tile
                resident((width, width)),                         # w1_state
                resident((a_width, width)),                       # w1_action
                resident((1, width)),                             # b1
                resident((width, width)),                         # w2
                resident((1, width)),                             # b2
            ],
            out_specs=pl.BlockSpec((bm, width), lambda i: (i, 0)),
        ),
        compiler_params=pltpu.CompilerParams(
            dimension_semantics=("parallel",),
            vmem_limit_bytes=vmem_limit,
        ),
    )(s, a, wgt["w1s"], wgt["w1a"], wgt["b1"], wgt["w2"], wgt["b2"])

    # TODO(synk): for very large emb (>= ~1024 f32 / ~2048 bf16) the two
    # resident emb x emb weights no longer fit v7x's 64 MiB VMEM; add an N-tile
    # grid axis with an f32 accumulator scratch (pl.when init/finalize) instead
    # of keeping both weights fully resident.

    return out.reshape(B, emb) if pack > 1 else out


def init_params(key, embedding_dim, action_dim):
    """Deterministic synthetic init matching nn.Linear shapes (w: [out, in])."""
    d_in = embedding_dim + action_dim
    k1, k2, k3, k4 = jax.random.split(key, 4)
    s1 = 1.0 / jnp.sqrt(jnp.float32(d_in))
    s2 = 1.0 / jnp.sqrt(jnp.float32(embedding_dim))
    w1 = jax.random.uniform(k1, (embedding_dim, d_in), jnp.float32, -s1, s1)
    b1 = jax.random.uniform(k2, (embedding_dim,), jnp.float32, -s1, s1)
    w2 = jax.random.uniform(k3, (embedding_dim, embedding_dim), jnp.float32, -s2, s2)
    b2 = jax.random.uniform(k4, (embedding_dim,), jnp.float32, -s2, s2)
    return w1, b1, w2, b2


def reference_forward(state_embedding, action, params):
    w1, b1, w2, b2 = params
    x = jnp.concatenate([state_embedding, action], axis=-1)
    h = _leaky_relu(x @ w1.T + b1)
    return _leaky_relu(h @ w2.T + b2)


if __name__ == "__main__":
    embedding_dim = 32
    action_dim = 2
    batch = 8

    key = jax.random.PRNGKey(0)
    k_params, k_state, k_action = jax.random.split(key, 3)
    params = init_params(k_params, embedding_dim, action_dim)
    state_embedding = jax.random.normal(k_state, (batch, embedding_dim), jnp.float32)
    action = jax.random.normal(k_action, (batch, action_dim), jnp.float32)

    ref = reference_forward(state_embedding, action, params)

    # f32 path, lane-packed (emb=32 -> 4 rows per dense 128-lane group).
    prep_f32 = prepare_params(params, embedding_dim, compute_dtype=jnp.float32)
    out_f32 = jax.block_until_ready(predictor_forward(state_embedding, action, prep_f32))
    assert out_f32.shape == (batch, embedding_dim)
    assert jnp.allclose(out_f32, ref, atol=1e-5, rtol=1e-5), "f32 kernel mismatch vs reference"

    # bf16 MXU operands + bf16 I/O (f32 accumulate / epilogue) fast path.
    # Two bf16 matmul layers with bf16 activations: ~1e-2-scale absolute error
    # vs the f32 reference is expected; tolerance reflects that.
    prep_bf16 = prepare_params(params, embedding_dim, compute_dtype=jnp.bfloat16)
    out_bf16 = jax.block_until_ready(predictor_forward(state_embedding, action, prep_bf16))
    assert out_bf16.shape == (batch, embedding_dim)
    assert jnp.allclose(out_bf16.astype(jnp.float32), ref, atol=1e-1, rtol=5e-2), \
        "bf16 kernel mismatch vs reference"

    # Ragged batch (not a multiple of the pack factor) exercises the unpacked
    # fallback; note there is no full-array padding anywhere.
    batch2 = 13
    k_s2, k_a2 = jax.random.split(jax.random.PRNGKey(1))
    state2 = jax.random.normal(k_s2, (batch2, embedding_dim), jnp.float32)
    action2 = jax.random.normal(k_a2, (batch2, action_dim), jnp.float32)
    out2 = jax.block_until_ready(predictor_forward(state2, action2, prep_f32))
    ref2 = reference_forward(state2, action2, params)
    assert out2.shape == (batch2, embedding_dim)
    assert jnp.allclose(out2, ref2, atol=1e-5, rtol=1e-5), "ragged-batch kernel mismatch"

    # Multi-step grid with a ragged final block (257 packed rows, bm=64):
    # exercises VMEM-resident weights across grid steps and dropped OOB writes.
    batch3 = 1028
    k_s3, k_a3 = jax.random.split(jax.random.PRNGKey(2))
    state3 = jax.random.normal(k_s3, (batch3, embedding_dim), jnp.float32)
    action3 = jax.random.normal(k_a3, (batch3, action_dim), jnp.float32)
    out3 = jax.block_until_ready(predictor_forward(state3, action3, prep_f32, bm=64))
    ref3 = reference_forward(state3, action3, params)
    assert out3.shape == (batch3, embedding_dim)
    assert jnp.allclose(out3, ref3, atol=1e-5, rtol=1e-5), "tiled-grid kernel mismatch"

    print("KERNEL_OK")
</pallas_src>

<mosaic_0001>
module attributes {stable_mosaic.version = 11 : i64} {
  func.func @_predictor_kernel(%arg0: i32, %arg1: memref<2x128xf32, #tpu.memory_space<vmem>>, %arg2: memref<2x8xf32, #tpu.memory_space<vmem>>, %arg3: memref<128x128xf32, #tpu.memory_space<vmem>>, %arg4: memref<8x128xf32, #tpu.memory_space<vmem>>, %arg5: memref<1x128xf32, #tpu.memory_space<vmem>>, %arg6: memref<128x128xf32, #tpu.memory_space<vmem>>, %arg7: memref<1x128xf32, #tpu.memory_space<vmem>>, %arg8: memref<2x128xf32, #tpu.memory_space<vmem>>) attributes {dimension_semantics = [#tpu.dimension_semantics<parallel>], iteration_bounds = array<i64: 1>, scalar_prefetch = 0 : i64, scratch_operands = 0 : i64, tpu.core_type = #tpu.core_type<tc>, window_params = [{transform_indices = @transform_0, window_bounds = array<i64: 2, 128>}, {transform_indices = @transform_1, window_bounds = array<i64: 2, 8>}, {pipeline_mode = #tpu.pipeline_mode<synchronous>, transform_indices = @transform_2, window_bounds = array<i64: 128, 128>}, {pipeline_mode = #tpu.pipeline_mode<synchronous>, transform_indices = @transform_3, window_bounds = array<i64: 8, 128>}, {pipeline_mode = #tpu.pipeline_mode<synchronous>, transform_indices = @transform_4, window_bounds = array<i64: 1, 128>}, {pipeline_mode = #tpu.pipeline_mode<synchronous>, transform_indices = @transform_5, window_bounds = array<i64: 128, 128>}, {pipeline_mode = #tpu.pipeline_mode<synchronous>, transform_indices = @transform_6, window_bounds = array<i64: 1, 128>}, {transform_indices = @transform_7, window_bounds = array<i64: 2, 128>}]} {
    %c0 = arith.constant 0 : index
    %c0_0 = arith.constant 0 : index
    %0 = vector.load %arg1[%c0, %c0_0] : memref<2x128xf32, #tpu.memory_space<vmem>>, vector<2x128xf32>
    %c0_1 = arith.constant 0 : index
    %c0_2 = arith.constant 0 : index
    %1 = vector.load %arg3[%c0_1, %c0_2] : memref<128x128xf32, #tpu.memory_space<vmem>>, vector<128x128xf32>
    %cst = arith.constant dense<0.000000e+00> : vector<2x128xf32>
    %2 = tpu.matmul %0, %1, %cst {dimension_numbers = #tpu.dot_dimension_numbers<[1], [0], [0], [1], [0, 0, 1, 1], [], []>} : vector<2x128xf32>, vector<128x128xf32>, vector<2x128xf32> -> vector<2x128xf32>
    %c0_3 = arith.constant 0 : index
    %c0_4 = arith.constant 0 : index
    %3 = vector.load %arg2[%c0_3, %c0_4] : memref<2x8xf32, #tpu.memory_space<vmem>>, vector<2x8xf32>
    %c0_5 = arith.constant 0 : index
    %c0_6 = arith.constant 0 : index
    %4 = vector.load %arg4[%c0_5, %c0_6] : memref<8x128xf32, #tpu.memory_space<vmem>>, vector<8x128xf32>
    %cst_7 = arith.constant dense<0.000000e+00> : vector<2x128xf32>
    %5 = tpu.matmul %3, %4, %cst_7 {dimension_numbers = #tpu.dot_dimension_numbers<[1], [0], [0], [1], [0, 0, 1, 1], [], []>} : vector<2x8xf32>, vector<8x128xf32>, vector<2x128xf32> -> vector<2x128xf32>
    %6 = arith.addf %2, %5 : vector<2x128xf32>
    %c0_8 = arith.constant 0 : index
    %c0_9 = arith.constant 0 : index
    %7 = vector.load %arg5[%c0_8, %c0_9] : memref<1x128xf32, #tpu.memory_space<vmem>>, vector<1x128xf32>
    %8 = vector.broadcast %7 : vector<1x128xf32> to vector<2x128xf32>
    %9 = arith.addf %6, %8 : vector<2x128xf32>
    %cst_10 = arith.constant 0.000000e+00 : f32
    %10 = vector.broadcast %cst_10 : f32 to vector<2x128xf32>
    %11 = arith.cmpf ogt, %9, %10 : vector<2x128xf32>
    %cst_11 = arith.constant 0.00999999977 : f32
    %12 = vector.broadcast %cst_11 : f32 to vector<2x128xf32>
    %13 = arith.mulf %12, %9 : vector<2x128xf32>
    %14 = arith.select %11, %9, %13 : vector<2x128xi1>, vector<2x128xf32>
    %c0_12 = arith.constant 0 : index
    %c0_13 = arith.constant 0 : index
    %15 = vector.load %arg6[%c0_12, %c0_13] : memref<128x128xf32, #tpu.memory_space<vmem>>, vector<128x128xf32>
    %cst_14 = arith.constant dense<0.000000e+00> : vector<2x128xf32>
    %16 = tpu.matmul %14, %15, %cst_14 {dimension_numbers = #tpu.dot_dimension_numbers<[1], [0], [0], [1], [0, 0, 1, 1], [], []>} : vector<2x128xf32>, vector<128x128xf32>, vector<2x128xf32> -> vector<2x128xf32>
    %c0_15 = arith.constant 0 : index
    %c0_16 = arith.constant 0 : index
    %17 = vector.load %arg7[%c0_15, %c0_16] : memref<1x128xf32, #tpu.memory_space<vmem>>, vector<1x128xf32>
    %18 = vector.broadcast %17 : vector<1x128xf32> to vector<2x128xf32>
    %19 = arith.addf %16, %18 : vector<2x128xf32>
    %cst_17 = arith.constant 0.000000e+00 : f32
    %20 = vector.broadcast %cst_17 : f32 to vector<2x128xf32>
    %21 = arith.cmpf ogt, %19, %20 : vector<2x128xf32>
    %cst_18 = arith.constant 0.00999999977 : f32
    %22 = vector.broadcast %cst_18 : f32 to vector<2x128xf32>
    %23 = arith.mulf %22, %19 : vector<2x128xf32>
    %24 = arith.select %21, %19, %23 : vector<2x128xi1>, vector<2x128xf32>
    %c0_19 = arith.constant 0 : index
    %c0_20 = arith.constant 0 : index
    %25 = vector.load %arg8[%c0_19, %c0_20] : memref<2x128xf32, #tpu.memory_space<vmem>>, vector<2x128xf32>
    tpu.vector_store %arg8[%c0_19, %c0_20], %24 {strides = array<i32>} : memref<2x128xf32, #tpu.memory_space<vmem>>, vector<2x128xf32>,
    return
  }
  func.func @transform_0(%arg0: i32) -> (i32, i32) {
    %c0_i32 = arith.constant 0 : i32
    %c0_i32_0 = arith.constant 0 : i32
    return %arg0, %c0_i32 : i32, i32
  }
  func.func @transform_1(%arg0: i32) -> (i32, i32) {
    %c0_i32 = arith.constant 0 : i32
    %c0_i32_0 = arith.constant 0 : i32
    return %arg0, %c0_i32 : i32, i32
  }
  func.func @transform_2(%arg0: i32) -> (i32, i32) {
    %c0_i32 = arith.constant 0 : i32
    %c0_i32_0 = arith.constant 0 : i32
    %c0_i32_1 = arith.constant 0 : i32
    return %c0_i32, %c0_i32_0 : i32, i32
  }
  func.func @transform_3(%arg0: i32) -> (i32, i32) {
    %c0_i32 = arith.constant 0 : i32
    %c0_i32_0 = arith.constant 0 : i32
    %c0_i32_1 = arith.constant 0 : i32
    return %c0_i32, %c0_i32_0 : i32, i32
  }
  func.func @transform_4(%arg0: i32) -> (i32, i32) {
    %c0_i32 = arith.constant 0 : i32
    %c0_i32_0 = arith.constant 0 : i32
    %c0_i32_1 = arith.constant 0 : i32
    return %c0_i32, %c0_i32_0 : i32, i32
  }
  func.func @transform_5(%arg0: i32) -> (i32, i32) {
    %c0_i32 = arith.constant 0 : i32
    %c0_i32_0 = arith.constant 0 : i32
    %c0_i32_1 = arith.constant 0 : i32
    return %c0_i32, %c0_i32_0 : i32, i32
  }
  func.func @transform_6(%arg0: i32) -> (i32, i32) {
    %c0_i32 = arith.constant 0 : i32
    %c0_i32_0 = arith.constant 0 : i32
    %c0_i32_1 = arith.constant 0 : i32
    return %c0_i32, %c0_i32_0 : i32, i32
  }
  func.func @transform_7(%arg0: i32) -> (i32, i32) {
    %c0_i32 = arith.constant 0 : i32
    %c0_i32_0 = arith.constant 0 : i32
    return %arg0, %c0_i32 : i32, i32
  }
}

</mosaic_0001>

<bundles_post_ra>
// kernel: tpu_custom_call.1
= control target key start
LH: loop header
LB: loop body
LE: loop exit
PB: predicated region body
PF: predicated region fallthrough
CT: control target
= control target key end

     0   :  { %12 = vsyncpa [#allocation3], 0  ;;  %s752_s0 = inlined_call_operand.hbm [shape: f32[2,128], index: 0, kind: input, shape index: {}]   ;;  %s753_s1 = inlined_call_operand.vmem [shape: f32[2,8], index: 1, kind: input, shape index: {}]   ;;  %s754_s2 = inlined_call_operand.hbm [shape: f32[128,128], index: 2, kind: input, shape index: {}]   ;;  %s755_s3 = inlined_call_operand.vmem [shape: f32[8,128], index: 3, kind: input, shape index: {}]   ;;  %s756_s4 = inlined_call_operand.vmem [shape: f32[1,128], index: 4, kind: input, shape index: {}]   ;;  %s757_s5 = inlined_call_operand.hbm [shape: f32[128,128], index: 5, kind: input, shape index: {}]   ;;  %s758_s6 = inlined_call_operand.vmem [shape: f32[1,128], index: 6, kind: input, shape index: {}]   ;;  %s759_s7 = inlined_call_operand.hbm [shape: f32[2,128], index: 7, kind: output, shape index: {}]  }
   0x1   :  { %13 = vsyncpa [#allocation6], 0 }
   0x2   :  { %14 = vsyncpa [#allocation4], 0  ;;  %s618_s24 = smov [#allocation5]   ;;  %s524_s28 = scalar_lea.hbm %s754_s2, 2048 }
   0x3   :  { %s32_s25 = sshll.u32 %s618_s24, 4  ;;  %p525_p0 = scmp.ne.s32.totalorder %s754_s2, %s524_s28  ;;  %s33_s25 = int_to_ptr.vmem [resolvable:$true] %s32_s25 }
   0x4   :  { %p528_p1 = scmp.lt.u32.totalorder %s524_s28, %s754_s2 }
   0x6   :  { %p530_p2 = pnand %p528_p1, %p525_p0 }
   0x8   :  { %533 = shalt.err (!%p530_p2)
}
   0x9   :  { %s534_s10 = scalar_lea.vmem %s33_s25, 2048  ;;  %p539_p4 = scmp.lt.s32.totalorder %s33_s25, %s33_s25 }
   0xa   :  { %p535_p3 = scmp.ne.s32.totalorder %s33_s25, %s534_s10  ;;  %p540_p5 = scmp.lt.s32.totalorder %s534_s10, %s534_s10 }
   0xc   :  { %p541_p6 = por %p540_p5, %p539_p4 }
   0xe   :  { %p542_p7 = pnand %p541_p6, %p535_p3 }
  0x10   :  { %545 = shalt.err (!%p542_p7)
}
  0x11   :  { %s619_s11 = smov 128   ;;  %s620_s12 = smov 8  }
  0x12   :  { %38 = dma.hbm_to_vmem [thread:$0]  %s754_s2, 2048, %s33_s25, [#allocation6], %s619_s11, %s619_s11, %s620_s12  }
  0x13   :  { %s621_s15 = smov [#allocation2]   ;;  %s622_s17 = smov [#allocation7]  }
  0x14   :  { %s21_s16 = sshll.u32 %s621_s15, 4  ;;  %s48_s18 = sshll.u32 %s622_s17, 4  ;;  %s22_s16 = int_to_ptr.vmem [resolvable:$true] %s21_s16  ;;  %s49_s18 = int_to_ptr.vmem [resolvable:$true] %s48_s18 }
  0x15   :  { %s546_s21 = scalar_lea.hbm %s752_s0, 32 }
  0x16   :  { %p547_p8 = scmp.ne.s32.totalorder %s752_s0, %s546_s21  ;;  %p550_p9 = scmp.lt.u32.totalorder %s546_s21, %s752_s0 }
  0x18   :  { %p552_p10 = pnand %p550_p9, %p547_p8 }
  0x1a   :  { %555 = shalt.err (!%p552_p10)
}
  0x1b   :  { %s556_s2 = scalar_lea.vmem %s22_s16, 32  ;;  %p561_p12 = scmp.lt.s32.totalorder %s22_s16, %s22_s16 }
  0x1c   :  { %p557_p11 = scmp.ne.s32.totalorder %s22_s16, %s556_s2  ;;  %p562_p13 = scmp.lt.s32.totalorder %s556_s2, %s556_s2 }
  0x1e   :  { %p563_p0 = por %p562_p13, %p561_p12 }
  0x20   :  { %p564_p1 = pnand %p563_p0, %p557_p11 }
  0x22   :  { %567 = shalt.err (!%p564_p1)
}
  0x23   :  { %24 = dma.hbm_to_vmem [thread:$0]  %s752_s0, 32, %s22_s16, [#allocation3]  }
  0x24   :  { %s568_s30 = scalar_lea.hbm %s757_s5, 2048 }
  0x25   :  { %p569_p2 = scmp.ne.s32.totalorder %s757_s5, %s568_s30  ;;  %p572_p3 = scmp.lt.u32.totalorder %s568_s30, %s757_s5 }
  0x27   :  { %p574_p4 = pnand %p572_p3, %p569_p2 }
  0x29   :  { %577 = shalt.err (!%p574_p4)
}
  0x2a   :  { %s578_s14 = scalar_lea.vmem %s49_s18, 2048  ;;  %p583_p6 = scmp.lt.s32.totalorder %s49_s18, %s49_s18 }
  0x2b   :  { %p579_p5 = scmp.ne.s32.totalorder %s49_s18, %s578_s14  ;;  %p584_p7 = scmp.lt.s32.totalorder %s578_s14, %s578_s14 }
  0x2d   :  { %p585_p8 = por %p584_p7, %p583_p6 }
  0x2f   :  { %p586_p9 = pnand %p585_p8, %p579_p5 }
  0x31   :  { %589 = shalt.err (!%p586_p9)
}
  0x32   :  { %54 = dma.hbm_to_vmem [thread:$0]  %s757_s5, 2048, %s49_s18, [#allocation6], %s619_s11, %s619_s11, %s620_s12  }
  0x33   :  { %612 = dma.done.wait [#allocation3], 32  }
  0x34   :  { %613 = vsyncadd [#allocation3], 4294967264 }
  0x35   :  { %614 = dma.done.wait [#allocation6], 4096  }
  0x36   :  { %615 = vsyncadd [#allocation6], 4294963200  ;;  %v623_v0 = vmov 0.0|0.0   ;;  %v624_v1 = vmov 0.0   ;;  %vm625_vm0 = vmmov 0   ;;  %v67_v2 = vld [vmem:[#allocation5] sm:$0xff] }
  0x37   :  { %467 = vmatprep.subr.bf16.mxu1 %v623_v0  ;;  %392 = vmatprep.subr.mxu0 %v624_v1  ;;  %v68_v3 = vld [vmem:[#allocation5 + $0x8] sm:$0xff]  ;;  %v69_v4 = vld [vmem:[#allocation5 + $0x10] sm:$0xff]  ;;  %v70_v6 = vld [vmem:[#allocation5 + $0x18] sm:$0xff]  ;;  %vm85_vm1 = vcmask 64512   ;;  %s626_s19 = smov [#allocation8]  }
  0x38   :  { %394 = vmatprep.mubr.msk.f32.mxu0 %vm625_vm0, %v624_v1  ;;  %429 = vmatprep.mubr.msk.f32.mxu1 %vm625_vm0, %v624_v1  ;;  %v468_v5 = vpack.c.bf16 %v68_v3, %v67_v2  ;;  %v471_v7 = vpack.c.bf16 %v70_v6, %v69_v4  ;;  %v71_v8 = vld [vmem:[#allocation5 + $0x20] sm:$0xff]  ;;  %v72_v9 = vld [vmem:[#allocation5 + $0x28] sm:$0xff]  ;;  %v84_v10 = vld [vmem:[%s755_s3] sm:$0xff]  ;;  %s343_s20 = sshll.u32 %s626_s19, 4  ;;  %s344_s20 = int_to_ptr.vmem [resolvable:$true] %s343_s20 }
  0x39   :  { %v83_v11 = vld [vmem:[%s753_s1] sm:$0x3]  ;;  %393 = vmatpush3.msra.mxu0 %v84_v10  ;;  %v240_v12 = vld [vmem:[#allocation7] sm:$0xff]  ;;  %v241_v13 = vld [vmem:[#allocation7 + $0x8] sm:$0xff]  ;;  %v474_v14 = vpack.c.bf16 %v72_v9, %v71_v8  ;;  %p595_p11 = scmp.lt.s32.totalorder %s344_s20, %s344_s20 }
  0x3a   :  { %469 = vmatpush3.bf16.msra.mxu1 %v468_v5  ;;  %395 = vmatmul.mubr.msk.f32.vlgmr.msra.gmra.mrb[0].mxu0 %vm85_vm1, %v83_v11  ;;  %v492_v15 = vpack.c.bf16 %v241_v13, %v240_v12  ;;  %v242_v16 = vld [vmem:[#allocation7 + $0x10] sm:$0xff]  ;;  %v243_v17 = vld [vmem:[#allocation7 + $0x18] sm:$0xff]  ;;  %v244_v21 = vld [vmem:[#allocation7 + $0x20] sm:$0xff] }
  0x3b   :  { %470 = vmatprep.subr.bf16.mxu1 %v623_v0  ;;  %v73_v18 = vld [vmem:[#allocation5 + $0x30] sm:$0xff]  ;;  %v74_v19 = vld [vmem:[#allocation5 + $0x38] sm:$0xff]  ;;  %491 = vmatprep.subr.bf16.mxu0 %v623_v0  ;;  %v495_v20 = vpack.c.bf16 %v243_v17, %v242_v16  ;;  %v245_v22 = vld [vmem:[#allocation7 + $0x28] sm:$0xff] }
  0x3c   :  { %493 = vmatpush3.bf16.msra.mxu0 %v492_v15  ;;  %464 = vmatprep.mubr.msk.f32.mxu0 %vm625_vm0, %v624_v1  ;;  %v477_v23 = vpack.c.bf16 %v74_v19, %v73_v18  ;;  %v75_v24 = vld [vmem:[#allocation5 + $0x40] sm:$0xff]  ;;  %v76_v25 = vld [vmem:[#allocation5 + $0x48] sm:$0xff]  ;;  %v498_v26 = vpack.c.bf16 %v245_v22, %v244_v21  ;;  %v246_v27 = vld [vmem:[#allocation7 + $0x30] sm:$0xff] }
  0x3d   :  { %494 = vmatprep.subr.bf16.mxu0 %v623_v0  ;;  %v247_v28 = vld [vmem:[#allocation7 + $0x38] sm:$0xff]  ;;  %v480_v29 = vpack.c.bf16 %v76_v25, %v75_v24  ;;  %v77_v30 = vld [vmem:[#allocation5 + $0x50] sm:$0xff]  ;;  %v248_v33 = vld [vmem:[#allocation7 + $0x40] sm:$0xff] }
  0x3e   :  { %472 = vmatpush3.bf16.msra.mxu1 %v471_v7  ;;  %v78_v31 = vld [vmem:[#allocation5 + $0x58] sm:$0xff]  ;;  %v501_v32 = vpack.c.bf16 %v247_v28, %v246_v27  ;;  %v249_v34 = vld [vmem:[#allocation7 + $0x48] sm:$0xff]  ;;  %v79_v36 = vld [vmem:[#allocation5 + $0x60] sm:$0xff] }
  0x3f   :  { %473 = vmatprep.subr.bf16.mxu1 %v623_v0  ;;  %v483_v35 = vpack.c.bf16 %v78_v31, %v77_v30  ;;  %v80_v37 = vld [vmem:[#allocation5 + $0x68] sm:$0xff]  ;;  %v504_v38 = vpack.c.bf16 %v249_v34, %v248_v33  ;;  %v250_v39 = vld [vmem:[#allocation7 + $0x50] sm:$0xff]  ;;  %v251_v40 = vld [vmem:[#allocation7 + $0x58] sm:$0xff] }
  0x40   :  { %496 = vmatpush3.bf16.msra.mxu0 %v495_v20  ;;  %v486_v41 = vpack.c.bf16 %v80_v37, %v79_v36  ;;  %v81_v42 = vld [vmem:[#allocation5 + $0x70] sm:$0xff]  ;;  %v82_v43 = vld [vmem:[#allocation5 + $0x78] sm:$0xff]  ;;  %v507_v44 = vpack.c.bf16 %v251_v40, %v250_v39  ;;  %v252_v47 = vld [vmem:[#allocation7 + $0x60] sm:$0xff] }
  0x41   :  { %497 = vmatprep.subr.bf16.mxu0 %v623_v0  ;;  %v489_v45 = vpack.c.bf16 %v82_v43, %v81_v42  ;;  %v66_v46 = vld [vmem:[#allocation2] sm:$0x3]  ;;  %v253_v48 = vld [vmem:[#allocation7 + $0x68] sm:$0xff]  ;;  %v254_v50 = vld [vmem:[#allocation7 + $0x70] sm:$0xff] }
  0x42   :  { %475 = vmatpush3.bf16.msra.mxu1 %v474_v14  ;;  %v510_v49 = vpack.c.bf16 %v253_v48, %v252_v47  ;;  %v255_v51 = vld [vmem:[#allocation7 + $0x78] sm:$0xff]  ;;  %v354_v56 = vld [vmem:[%s756_s4] ss:$0 sm:$0xff]  ;;  %s590_s4 = scalar_lea.vmem %s344_s20, 32 }
  0x43   :  { %476 = vmatprep.subr.bf16.mxu1 %v623_v0  ;;  %v513_v52 = vpack.c.bf16 %v255_v51, %v254_v50  ;;  %v355_v62 = vld [vmem:[%s758_s6] ss:$0 sm:$0xff]  ;;  %p591_p10 = scmp.ne.s32.totalorder %s344_s20, %s590_s4  ;;  %p596_p12 = scmp.lt.s32.totalorder %s590_s4, %s590_s4 }
  0x44   :  { %499 = vmatpush3.bf16.msra.mxu0 %v498_v26 }
  0x45   :  { %500 = vmatprep.subr.bf16.mxu0 %v623_v0  ;;  %p597_p13 = por %p596_p12, %p595_p11 }
  0x46   :  { %478 = vmatpush3.bf16.msra.mxu1 %v477_v23 }
  0x47   :  { %479 = vmatprep.subr.bf16.mxu1 %v623_v0  ;;  %p598_p0 = pnand %p597_p13, %p591_p10 }
  0x48   :  { %502 = vmatpush3.bf16.msra.mxu0 %v501_v32 }
  0x49   :  { %503 = vmatprep.subr.bf16.mxu0 %v623_v0 }
  0x4a   :  { %481 = vmatpush3.bf16.msra.mxu1 %v480_v29 }
  0x4b   :  { %482 = vmatprep.subr.bf16.mxu1 %v623_v0 }
  0x4c   :  { %505 = vmatpush3.bf16.msra.mxu0 %v504_v38 }
  0x4d   :  { %506 = vmatprep.subr.bf16.mxu0 %v623_v0 }
  0x4e   :  { %484 = vmatpush3.bf16.msra.mxu1 %v483_v35 }
  0x4f   :  { %485 = vmatprep.subr.bf16.mxu1 %v623_v0 }
  0x50   :  { %508 = vmatpush3.bf16.msra.mxu0 %v507_v44 }
  0x51   :  { %509 = vmatprep.subr.bf16.mxu0 %v623_v0 }
  0x52   :  { %487 = vmatpush3.bf16.msra.mxu1 %v486_v41 }
  0x53   :  { %488 = vmatprep.subr.bf16.mxu1 %v623_v0 }
  0x54   :  { %511 = vmatpush3.bf16.msra.mxu0 %v510_v49 }
  0x55   :  { %512 = vmatprep.subr.bf16.mxu0 %v623_v0 }
  0x56   :  { %490 = vmatpush3.bf16.msra.mxu1 %v489_v45 }
  0x58   :  { %514 = vmatpush3.bf16.msra.mxu0 %v513_v52 }
  0x59   :  { %430 = vmatmul.mubr.f32.vlgmr.msra.gmra.mrb[0].mxu1 %v66_v46 }
 0x10d   :  { %v155_v53 = vpop.f32.mrb[0].mxu0 }
 0x10e   :  { %v396_v54 = vpop.f32.mrb[1].mxu0 }
 0x12c   :  { %v225_v55 = vpop.f32.mrb[0].mxu1 }
 0x12d   :  { %v226_v57 = vadd.f32 %v225_v55, %v155_v53  ;;  %v431_v58 = vpop.f32.mrb[1].mxu1 }
 0x12f   :  { %v236_v59 = vadd.f32 %v354_v56, %v226_v57 }
 0x131   :  { %v238_v60 = vmul.f32 0.01, %v236_v59  ;;  %vm237_vm2 = vcmp.gt.f32.partialorder %v236_v59, 0.0 }
 0x133   :  { %v239_v61 = vsel %vm237_vm2, %v236_v59, %v238_v60 }
 0x134   :  { %465 = vmatmul.mubr.f32.vlgmr.msra.gmra.mrb[2].mxu0 %v239_v61 }
 0x207   :  { %v329_v63 = vpop.f32.mrb[2].mxu0 }
 0x208   :  { %v330_v0 = vadd.f32 %v355_v62, %v329_v63  ;;  %v466_v1 = vpop.f32.mrb[3].mxu0 }
 0x20a   :  { %v334_v2 = vmul.f32 0.01, %v330_v0  ;;  %vm333_vm3 = vcmp.gt.f32.partialorder %v330_v0, 0.0 }
 0x20c   :  { %v335_v3 = vsel %vm333_vm3, %v330_v0, %v334_v2 }
 0x20d   :  { %336 = vst [vmem:[#allocation8] sm:$0x3] %v335_v3 }
 0x20e   :  { %601 = shalt.err (!%p598_p0)
}
 0x20f   :  { %s602_s6 = scalar_lea.hbm %s759_s7, 32 }
 0x210   :  { %p603_p1 = scmp.ne.s32.totalorder %s759_s7, %s602_s6  ;;  %p606_p2 = scmp.lt.u32.totalorder %s602_s6, %s759_s7 }
 0x212   :  { %p608_p3 = pnand %p606_p2, %p603_p1 }
 0x214   :  { %611 = shalt.err (!%p608_p3)
}
 0x215   :  { %346 = dma.vmem_to_hbm [thread:$0]  %s344_s20, 32, %s759_s7, [#allocation4]  }
 0x216   :  { %616 = dma.done.wait [#allocation4], 32  }
 0x217   :  { %617 = vsyncadd [#allocation4], 4294967264 }
 0x218   :  { %350 = vsyncpa [#allocation3], 1 }
 0x219   :  { %351 = vsyncpa [#allocation6], 1 }
 0x21a   :  { %352 = vsyncpa [#allocation4], 1 }

</bundles_post_ra>
